<compile_context>
chip_gen: v6e
topology: v6e:2x2x1
jax: 0.10.0
libtpu: 0.0.40
codegen_flags: <defaults>
</compile_context>

<pallas_src>
import functools

import jax
import jax.numpy as jnp
from jax.experimental import pallas as pl
from jax.experimental.pallas import tpu as pltpu


def _dualmatch_kernel(x_ref, o_ref, *, gamma):
    # x_ref: (n, c, tl) VMEM tile ; o_ref: (n, n, tl) VMEM tile. l is on lanes.
    x = x_ref[...].astype(jnp.float32)           # f32 accumulation on the VPU
    n, c, _ = x.shape
    scale_input = n > c                          # fold gamma into cheaper side
    lhs = x * gamma if scale_input else x
    # out[i, j, t] = sum_c lhs[i, c, t] * x[j, c, t]   (VPU MAC, lane axis = l)
    for i in range(n):                           # n is small & static: unrolled
        row = jnp.sum(lhs[i][None, :, :] * x, axis=1)   # (n, tl)
        if not scale_input:
            row = row * gamma
        o_ref[i, :, :] = row.astype(o_ref.dtype)


def _pick_tl(n, c, l, itemsize, vmem_budget_bytes=24 * 1024 * 1024):
    """Largest l-tile whose double-buffered in/out tiles + f32 scratch fit VMEM."""
    per_col = 2 * (n * c + n * n) * itemsize + 2 * (n * c + n * n) * 4
    max_tl = max(1, vmem_budget_bytes // max(per_col, 1))
    if l <= max_tl:
        # Whole l fits; still split into lane-aligned tiles when large enough
        # so the grid pipelines (and shards across v7x's two TensorCores).
        for t in (1024, 512, 256):
            if l > t and l % t == 0:
                return t
        return l
    # l does not fit in one tile: largest multiple of 128 dividing l that fits.
    t = min((max_tl // 128) * 128, 4096)
    while t >= 128:
        if l % t == 0:
            return t
        t -= 128
    # TODO(synk): ragged l that does not fit VMEM needs padding/masking; the
    # shapes this loss module is used with never hit this branch.
    return l


def dualmatch(x, gamma=0.1, tl=None):
    """x: (n, c, l) -> (n, n, l), matching DualMatch.forward."""
    n, c, l = x.shape
    itemsize = jnp.dtype(x.dtype).itemsize
    if tl is None:
        tl = _pick_tl(n, c, l, itemsize)
    assert l % tl == 0, "l must be divisible by the l-tile size"

    # NOTE: for very large n (>= 128) an MXU-tiled path over (ni, nj) blocks
    # would be preferable; this loss module runs with small batch n, so the
    # lane-vectorized VPU path is the right default.
    return pl.pallas_call(
        functools.partial(_dualmatch_kernel, gamma=gamma),
        out_shape=jax.ShapeDtypeStruct((n, n, l), x.dtype),
        grid_spec=pltpu.PrefetchScalarGridSpec(
            num_scalar_prefetch=0,
            grid=(l // tl,),
            in_specs=[pl.BlockSpec((n, c, tl), lambda i: (0, 0, i))],
            out_specs=pl.BlockSpec((n, n, tl), lambda i: (0, 0, i)),
        ),
        compiler_params=pltpu.CompilerParams(
            dimension_semantics=("parallel",),
        ),
        cost_estimate=pl.CostEstimate(
            flops=2 * n * n * c * l,
            transcendentals=0,
            bytes_accessed=(n * c * l + n * n * l) * itemsize,
        ),
    )(x)


if __name__ == "__main__":
    # Small shapes consistent with the module: x is (n, c, l).
    n, c, l = 2, 4, 8
    gamma = 0.1

    key = jax.random.PRNGKey(0)
    x = jax.random.normal(key, (n, c, l), dtype=jnp.float32)

    sim_mat = jax.block_until_ready(dualmatch(x, gamma=gamma))

    # Pure-JAX reference check of the PyTorch semantics.
    ref = gamma * jnp.einsum("icl,jcl->ijl", x, x)
    assert sim_mat.shape == (n, n, l)
    assert jnp.allclose(sim_mat, ref, atol=1e-5, rtol=1e-5)

    print("KERNEL_OK")
</pallas_src>

<mosaic_0001>
module attributes {stable_mosaic.version = 11 : i64} {
  func.func @_dualmatch_kernel(%arg0: i32, %arg1: memref<2x4x8xf32, #tpu.memory_space<vmem>>, %arg2: memref<2x2x8xf32, #tpu.memory_space<vmem>>) attributes {dimension_semantics = [#tpu.dimension_semantics<parallel>], iteration_bounds = array<i64: 1>, scalar_prefetch = 0 : i64, scratch_operands = 0 : i64, tpu.core_type = #tpu.core_type<tc>, window_params = [{transform_indices = @transform_0, window_bounds = array<i64: 2, 4, 8>}, {transform_indices = @transform_1, window_bounds = array<i64: 2, 2, 8>}]} {
    %c0 = arith.constant 0 : index
    %c0_0 = arith.constant 0 : index
    %c0_1 = arith.constant 0 : index
    %0 = vector.load %arg1[%c0, %c0_0, %c0_1] : memref<2x4x8xf32, #tpu.memory_space<vmem>>, vector<2x4x8xf32>
    %1 = vector.extract_strided_slice %0 {offsets = [0, 0, 0], sizes = [1, 4, 8], strides = [1, 1, 1]} : vector<2x4x8xf32> to vector<1x4x8xf32>
    %2 = vector.shape_cast %1 : vector<1x4x8xf32> to vector<4x8xf32>
    %3 = vector.shape_cast %2 : vector<4x8xf32> to vector<1x4x8xf32>
    %4 = vector.broadcast %3 : vector<1x4x8xf32> to vector<2x4x8xf32>
    %5 = arith.mulf %4, %0 : vector<2x4x8xf32>
    %cst = arith.constant dense<0.000000e+00> : vector<2x8xf32>
    %6 = vector.multi_reduction <add>, %5, %cst [1] : vector<2x4x8xf32> to vector<2x8xf32>
    %cst_2 = arith.constant 1.000000e-01 : f32
    %7 = vector.broadcast %cst_2 : f32 to vector<2x8xf32>
    %8 = arith.mulf %6, %7 : vector<2x8xf32>
    %c0_3 = arith.constant 0 : index
    %c0_4 = arith.constant 0 : index
    %c0_5 = arith.constant 0 : index
    %9 = vector.load %arg2[%c0_3, %c0_4, %c0_5] : memref<2x2x8xf32, #tpu.memory_space<vmem>>, vector<1x2x8xf32>
    %10 = vector.shape_cast %9 : vector<1x2x8xf32> to vector<2x8xf32>
    %11 = vector.shape_cast %8 : vector<2x8xf32> to vector<1x2x8xf32>
    tpu.vector_store %arg2[%c0_3, %c0_4, %c0_5], %11 {strides = array<i32>} : memref<2x2x8xf32, #tpu.memory_space<vmem>>, vector<1x2x8xf32>,
    %12 = vector.extract_strided_slice %0 {offsets = [1, 0, 0], sizes = [1, 4, 8], strides = [1, 1, 1]} : vector<2x4x8xf32> to vector<1x4x8xf32>
    %13 = vector.shape_cast %12 : vector<1x4x8xf32> to vector<4x8xf32>
    %14 = vector.shape_cast %13 : vector<4x8xf32> to vector<1x4x8xf32>
    %15 = vector.broadcast %14 : vector<1x4x8xf32> to vector<2x4x8xf32>
    %16 = arith.mulf %15, %0 : vector<2x4x8xf32>
    %cst_6 = arith.constant dense<0.000000e+00> : vector<2x8xf32>
    %17 = vector.multi_reduction <add>, %16, %cst_6 [1] : vector<2x4x8xf32> to vector<2x8xf32>
    %cst_7 = arith.constant 1.000000e-01 : f32
    %18 = vector.broadcast %cst_7 : f32 to vector<2x8xf32>
    %19 = arith.mulf %17, %18 : vector<2x8xf32>
    %c1 = arith.constant 1 : index
    %c0_8 = arith.constant 0 : index
    %c0_9 = arith.constant 0 : index
    %20 = vector.load %arg2[%c1, %c0_8, %c0_9] : memref<2x2x8xf32, #tpu.memory_space<vmem>>, vector<1x2x8xf32>
    %21 = vector.shape_cast %20 : vector<1x2x8xf32> to vector<2x8xf32>
    %22 = vector.shape_cast %19 : vector<2x8xf32> to vector<1x2x8xf32>
    tpu.vector_store %arg2[%c1, %c0_8, %c0_9], %22 {strides = array<i32>} : memref<2x2x8xf32, #tpu.memory_space<vmem>>, vector<1x2x8xf32>,
    return
  }
  func.func @transform_0(%arg0: i32) -> (i32, i32, i32) {
    %c0_i32 = arith.constant 0 : i32
    %c0_i32_0 = arith.constant 0 : i32
    %c0_i32_1 = arith.constant 0 : i32
    return %c0_i32, %c0_i32_0, %arg0 : i32, i32, i32
  }
  func.func @transform_1(%arg0: i32) -> (i32, i32, i32) {
    %c0_i32 = arith.constant 0 : i32
    %c0_i32_0 = arith.constant 0 : i32
    %c0_i32_1 = arith.constant 0 : i32
    return %c0_i32, %c0_i32_0, %arg0 : i32, i32, i32
  }
}

</mosaic_0001>

<bundles_post_ra>
// kernel: tpu_custom_call.1
= control target key start
LH: loop header
LB: loop body
LE: loop exit
PB: predicated region body
PF: predicated region fallthrough
CT: control target
= control target key end

     0   :  { %6 = vsyncpa [#allocation3], 0  ;;  %s154_s0 = inlined_call_operand.hbm [shape: f32[2,4,8], index: 0, kind: input, shape index: {}]   ;;  %s155_s1 = inlined_call_operand.hbm [shape: f32[2,2,8], index: 1, kind: output, shape index: {}]  }
   0x1   :  { %7 = vsyncpa [#allocation4], 0  ;;  %s132_s6 = smov [#allocation2]  }
   0x2   :  { %s13_s7 = sshll.u32 %s132_s6, 4  ;;  %s14_s7 = int_to_ptr.vmem [resolvable:$true] %s13_s7 }
   0x3   :  { %s96_s8 = scalar_lea.vmem %s14_s7, 128  ;;  %p101_p1 = scmp.lt.s32.totalorder %s14_s7, %s14_s7 }
   0x4   :  { %p97_p0 = scmp.ne.s32.totalorder %s14_s7, %s96_s8  ;;  %p102_p2 = scmp.lt.s32.totalorder %s96_s8, %s96_s8 }
   0x6   :  { %p103_p3 = por %p102_p2, %p101_p1 }
   0x8   :  { %p104_p4 = pnand %p103_p3, %p97_p0 }
   0xa   :  { %107 = shalt.err (!%p104_p4)
}
   0xb   :  { %s133_s9 = smov 64   ;;  %s134_s10 = smov 4  }
   0xc   :  { %19 = dma.hbm_to_vmem [thread:$0]  %s154_s0, 128, %s14_s7, [#allocation3], %s133_s9, %s133_s9, %s134_s10  }
   0xd   :  { %128 = dma.done.wait [#allocation3], 128  }
   0xe   :  { %129 = vsyncadd [#allocation3], 4294967168  ;;  %v23_v0 = vld [vmem:[#allocation2] sm:$0xf]  ;;  %v24_v1 = vld [vmem:[#allocation2 + $0x4] sm:$0xf] }
   0xf   :  { %vm27_vm0 = vcmask 60416   ;;  %v25_v2 = vmul.f32 %v23_v0, %v23_v0  ;;  %v26_v3 = vmul.f32 %v24_v1, %v23_v0  ;;  %v51_v4 = vmul.f32 %v24_v1, %v24_v1  ;;  %s135_s0 = smov [#allocation5]  }
  0x10   :  { %s70_s13 = sshll.u32 %s135_s0, 4  ;;  %vm46_vm1 = vcmask 1041409   ;;  %vm49_vm2 = vcmask 58368   ;;  %s71_s13 = int_to_ptr.vmem [resolvable:$true] %s70_s13 }
  0x11   :  { %v28_v5 = vsel %vm27_vm0, %v25_v2, 0.0  ;;  %v35_v6 = vsel %vm27_vm0, %v26_v3, 0.0  ;;  %v52_v7 = vsel %vm27_vm0, %v51_v4, 0.0  ;;  %s108_s14 = scalar_lea.vmem %s71_s13, 64  ;;  %p113_p6 = scmp.lt.s32.totalorder %s71_s13, %s71_s13 }
  0x12   :  { %v29_v8 = vrot.slane %v28_v5, 4  ;;  %v36_v9 = vrot.slane %v35_v6, 4  ;;  %v53_v10 = vrot.slane %v52_v7, 4  ;;  %p109_p5 = scmp.ne.s32.totalorder %s71_s13, %s108_s14  ;;  %p114_p7 = scmp.lt.s32.totalorder %s108_s14, %s108_s14 }
  0x14   :  { %v30_v11 = vadd.f32 %v29_v8, %v28_v5  ;;  %v37_v12 = vadd.f32 %v36_v9, %v35_v6  ;;  %v54_v13 = vadd.f32 %v53_v10, %v52_v7  ;;  %p115_p8 = por %p114_p7, %p113_p6 }
  0x16   :  { %v31_v14 = vrot.slane %v30_v11, 2  ;;  %v38_v15 = vrot.slane %v37_v12, 2  ;;  %v55_v16 = vrot.slane %v54_v13, 2  ;;  %p116_p9 = pnand %p115_p8, %p109_p5 }
  0x18   :  { %v32_v17 = vadd.f32 %v31_v14, %v30_v11  ;;  %v39_v18 = vadd.f32 %v38_v15, %v37_v12  ;;  %v56_v19 = vadd.f32 %v55_v16, %v54_v13 }
  0x1a   :  { %v33_v20 = vrot.slane %v32_v17, 1  ;;  %v40_v21 = vrot.slane %v39_v18, 1  ;;  %v57_v22 = vrot.slane %v56_v19, 1 }
  0x1c   :  { %v34_v23 = vadd.f32 %v33_v20, %v32_v17  ;;  %v41_v24 = vadd.f32 %v40_v21, %v39_v18  ;;  %v58_v25 = vadd.f32 %v57_v22, %v56_v19 }
  0x1e   :  { %v42_v26 = vmul.f32 0.1, %v34_v23  ;;  %v43_v27 = vmul.f32 0.1, %v41_v24  ;;  %v59_v28 = vmul.f32 0.1, %v58_v25 }
  0x20   :  { %v47_v29 = vsel %vm46_vm1, %v43_v27, %v42_v26  ;;  %v61_v30 = vsel %vm46_vm1, %v59_v28, %v43_v27 }
  0x21   :  { %50 = vst.msk [vmem:[#allocation5] sm:$0x3] %vm49_vm2, %v47_v29  ;;  %64 = vst.msk [vmem:[#allocation5 + $0x2] sm:$0x3] %vm49_vm2, %v61_v30 }
  0x22   :  { %119 = shalt.err (!%p116_p9)
}
  0x23   :  { %s136_s15 = smov 32   ;;  %s137_s16 = smov 2  }
  0x24   :  { %76 = dma.vmem_to_hbm [thread:$0]  %s71_s13, 64, %s155_s1, [#allocation4], %s136_s15, %s136_s15, %s137_s16  }
  0x25   :  { %130 = dma.done.wait [#allocation4], 64  }
  0x26   :  { %131 = vsyncadd [#allocation4], 4294967232 }
  0x27   :  { %80 = vsyncpa [#allocation3], 1 }
  0x28   :  { %81 = vsyncpa [#allocation4], 1 }

</bundles_post_ra>
